<compile_context>
chip_gen: v6e
topology: v6e:2x2x1
jax: 0.10.0
libtpu: 0.0.40
codegen_flags: <defaults>
</compile_context>

<pallas_src>
import functools

import numpy as np
import jax
import jax.numpy as jnp
from jax.experimental import pallas as pl
from jax.experimental.pallas import tpu as pltpu


def _spft_kernel(l, ck, TB, compute_dtype,
                 x_ref, dftT_ref, w2_ref, iT_ref, o_ref):
    """One batch tile; W = TB * ck lanes.

    x_ref   : (N, W)         input tile, columns ordered (tb, i)  [tb-major]
    dftT_ref: (2l, N)        rows [0:l] = cos(2*pi*f*n/N), rows [l:2l] = -sin(...)
    w2_ref  : (l, 2ck, 2ck)  per-mode real-block weights [[Wr, Wi], [-Wi, Wr]]
    iT_ref  : (N, 2l)        irfft matrix [icos | isin] (1/N and 1/2-weights folded in,
                             DC / Nyquist imaginary columns exactly zero)
    o_ref   : (N, W)         output tile, columns ordered (tb, o)
    """
    W = TB * ck

    # 1) Forward real DFT (rfft truncated to l modes), fused cos | -sin rows.
    #    Output lane width W (lane-dense), contraction depth K = N.
    X = jnp.dot(dftT_ref[...], x_ref[...],
                preferred_element_type=jnp.float32)                    # (2l, W) f32

    # 2) Per-mode complex channel mixing as ONE batched MXU matmul over l modes:
    #    [Or | Oi] = [Xr | Xi] @ [[Wr, Wi], [-Wi, Wr]]   (contraction over 2ck).
    #    The intermediate is tiny (2l x W), so the lane regrouping is cheap.
    Xr = X[:l, :].reshape(l, TB, ck)
    Xi = X[l:, :].reshape(l, TB, ck)
    Z = jnp.concatenate([Xr, Xi], axis=-1).astype(compute_dtype)       # (l, TB, 2ck)
    R3 = jnp.einsum('fbi,fio->fbo', Z, w2_ref[...],
                    preferred_element_type=jnp.float32)                # (l, TB, 2ck)

    # 3) Inverse real DFT over the l retained modes, fused [icos | isin]:
    #    y = iT (N, 2l) @ [Or ; Oi] (2l, W)  -> lane-dense (N, W) store.
    R = jnp.concatenate([R3[:, :, :ck], R3[:, :, ck:]], axis=0)        # (2l, TB, ck)
    R = R.reshape(2 * l, W).astype(compute_dtype)
    y = jnp.dot(iT_ref[...], R, preferred_element_type=jnp.float32)    # (N, W)
    o_ref[...] = y.astype(o_ref.dtype)


@functools.partial(jax.jit, static_argnames=("modes1", "batch_tile",
                                              "compute_dtype", "trig_dtype"))
def sparse_kernel_ft1d(x, wr, wi, modes1, *, batch_tile=None,
                       compute_dtype=jnp.bfloat16, trig_dtype=None):
    """Forward pass of sparseKernelFT1d.

    x        : (B, N, c, k) float32
    wr, wi   : (c*k, c*k, modes1) real / imag parts of weights1 (index: in, out, mode)
    returns  : (B, N, c, k) float32
    """
    B, N, c, k = x.shape
    ck = c * k
    F = N // 2 + 1
    l = min(modes1, F)
    if trig_dtype is None:
        # For very large N you may pass trig_dtype=jnp.float32 to keep the DFT
        # matrices in f32 (bf16 trig rounding grows with N).
        trig_dtype = compute_dtype

    # ---- mode-truncated DFT matrices (numpy float64 -> exact compile-time consts) --
    n_ = np.arange(N, dtype=np.float64)
    f_ = np.arange(l, dtype=np.float64)
    ang = 2.0 * np.pi * np.outer(f_, n_) / N                           # (l, N)
    cos_fn = np.cos(ang)
    sin_fn = np.sin(ang)
    dftT = np.concatenate([cos_fn, -sin_fn], axis=0)                   # (2l, N)  rfft
    idx = np.arange(l)
    special = (idx == 0) | ((N % 2 == 0) & (idx == F - 1))             # DC / Nyquist
    wgt = np.where(special, 1.0, 2.0)
    imag_w = np.where(special, 0.0, wgt)                               # exact-zero cols
    icosT = (cos_fn * wgt[:, None] / N).T                              # (N, l)
    isinT = (-sin_fn * imag_w[:, None] / N).T                          # (N, l)
    iT = np.concatenate([icosT, isinT], axis=1)                        # (N, 2l) irfft

    # ---- per-mode real-block weights [[Wr, Wi], [-Wi, Wr]] -> (l, 2ck, 2ck) --------
    wr_l = wr[:, :, :l].astype(jnp.float32)                            # (ck, ck, l) (i,o,f)
    wi_l = wi[:, :, :l].astype(jnp.float32)
    w2 = jnp.concatenate(
        [jnp.concatenate([wr_l, wi_l], axis=1),
         jnp.concatenate([-wi_l, wr_l], axis=1)], axis=0)              # (2ck, 2ck, l)
    w2 = jnp.transpose(w2, (2, 0, 1)).astype(compute_dtype)            # (l, 2ck, 2ck)

    # ---- batch tile: lane width TB*ck ~ 256, VMEM-budget aware, >= 2 grid steps ----
    if batch_tile is None:
        bcd = np.dtype(compute_dtype).itemsize
        tb = max(1, 256 // max(ck, 1))                    # TB*ck multiple of 256 when ck|256
        per_b = N * ck * (2 * bcd + 2 * 4)                # double-buffered in (cd) + out (f32)
        tb = min(tb, max(1, (20 * 1024 * 1024) // per_b)) # ~20 MiB of tiles (fits v7x VMEM)
        if B >= 2:
            tb = min(tb, (B + 1) // 2)                    # >= 2 parallel steps (v7x: 2 TCs)
        batch_tile = tb
    TB = int(max(1, min(batch_tile, B)))
    Bp = pl.cdiv(B, TB) * TB
    G = Bp // TB
    Wl = TB * ck

    # ---- single XLA-side transpose to the lane-dense (G, N, TB*ck) layout ----------
    xr = x.reshape(B, N, ck).astype(compute_dtype)
    if Bp != B:
        xr = jnp.pad(xr, ((0, Bp - B), (0, 0), (0, 0)))
    xk = xr.reshape(G, TB, N, ck).transpose(0, 2, 1, 3).reshape(G, N, Wl)

    kernel = functools.partial(_spft_kernel, l, ck, TB, compute_dtype)
    out = pl.pallas_call(
        kernel,
        out_shape=jax.ShapeDtypeStruct((G, N, Wl), jnp.float32),
        grid=(G,),
        in_specs=[
            pl.BlockSpec((None, N, Wl), lambda b: (b, 0, 0)),
            pl.BlockSpec((2 * l, N), lambda b: (0, 0)),
            pl.BlockSpec((l, 2 * ck, 2 * ck), lambda b: (0, 0, 0)),
            pl.BlockSpec((N, 2 * l), lambda b: (0, 0)),
        ],
        out_specs=pl.BlockSpec((None, N, Wl), lambda b: (b, 0, 0)),
        compiler_params=pltpu.CompilerParams(
            dimension_semantics=("parallel",),
            vmem_limit_bytes=48 * 1024 * 1024),
    )(xk,
      jnp.asarray(dftT, dtype=trig_dtype),
      w2,
      jnp.asarray(iT, dtype=trig_dtype))

    # One XLA-side transpose back to the module's natural (B, N, c, k) layout.
    y = out.reshape(G, N, TB, ck).transpose(0, 2, 1, 3).reshape(Bp, N, ck)
    return y[:B].reshape(B, N, c, k)


def ref_forward_np(x, wr, wi, modes1):
    """float64 numpy reference mirroring the PyTorch forward (uses np.fft)."""
    x = np.asarray(x, np.float64)
    wr = np.asarray(wr, np.float64)
    wi = np.asarray(wi, np.float64)
    B, N, c, k = x.shape
    ck = c * k
    F = N // 2 + 1
    l = min(modes1, F)
    xv = np.transpose(x.reshape(B, N, ck), (0, 2, 1))
    xf = np.fft.rfft(xv, axis=-1)
    W = wr + 1j * wi
    out_ft = np.zeros((B, ck, F), dtype=np.complex128)
    out_ft[:, :, :l] = np.einsum('bix,iox->box', xf[:, :, :l], W[:, :, :l])
    y = np.fft.irfft(out_ft, n=N, axis=-1)
    return np.transpose(y, (0, 2, 1)).reshape(B, N, c, k)


if __name__ == "__main__":
    # module hyper-params: k=8, alpha(=modes1)=5, c=1  ->  c*k = 8 channels
    B, N, c, k = 4, 16, 1, 8
    alpha = 5
    ck = c * k

    key = jax.random.PRNGKey(0)
    kw1, kw2, kx = jax.random.split(key, 3)
    scale = 1.0 / (c * k * c * k)
    # torch.rand(...) on cfloat -> uniform[0,1) for real and imag parts, times scale
    wr = scale * jax.random.uniform(kw1, (ck, ck, alpha), dtype=jnp.float32)
    wi = scale * jax.random.uniform(kw2, (ck, ck, alpha), dtype=jnp.float32)
    x = jax.random.normal(kx, (B, N, c, k), dtype=jnp.float32)

    ref = ref_forward_np(np.asarray(x), np.asarray(wr), np.asarray(wi), alpha)

    # float32 MXU path: strict check (grid of 2 parallel steps, TB*ck = 16 lanes here).
    out_f32 = jax.block_until_ready(
        sparse_kernel_ft1d(x, wr, wi, alpha, batch_tile=2,
                           compute_dtype=jnp.float32))
    np.testing.assert_allclose(np.asarray(out_f32), ref, rtol=2e-3, atol=2e-5)

    # Default bf16-operand MXU path (f32 accumulation), recommended for v6e / v7x.
    out_bf16 = jax.block_until_ready(
        sparse_kernel_ft1d(x, wr, wi, alpha, batch_tile=2))
    np.testing.assert_allclose(np.asarray(out_bf16), ref, rtol=5e-2, atol=2e-2)

    print("KERNEL_OK")
</pallas_src>

<mosaic_0001>
module attributes {stable_mosaic.version = 11 : i64} {
  func.func @_spft_kernel(%arg0: i32, %arg1: memref<1x16x16xf32, #tpu.memory_space<vmem>>, %arg2: memref<10x16xf32, #tpu.memory_space<vmem>>, %arg3: memref<5x16x16xf32, #tpu.memory_space<vmem>>, %arg4: memref<16x10xf32, #tpu.memory_space<vmem>>, %arg5: memref<1x16x16xf32, #tpu.memory_space<vmem>>) attributes {dimension_semantics = [#tpu.dimension_semantics<parallel>], iteration_bounds = array<i64: 2>, scalar_prefetch = 0 : i64, scratch_operands = 0 : i64, tpu.core_type = #tpu.core_type<tc>, window_params = [{transform_indices = @transform_0, window_bounds = array<i64: 1, 16, 16>}, {pipeline_mode = #tpu.pipeline_mode<synchronous>, transform_indices = @transform_1, window_bounds = array<i64: 10, 16>}, {pipeline_mode = #tpu.pipeline_mode<synchronous>, transform_indices = @transform_2, window_bounds = array<i64: 5, 16, 16>}, {pipeline_mode = #tpu.pipeline_mode<synchronous>, transform_indices = @transform_3, window_bounds = array<i64: 16, 10>}, {transform_indices = @transform_4, window_bounds = array<i64: 1, 16, 16>}]} {
    %c0 = arith.constant 0 : index
    %c0_0 = arith.constant 0 : index
    %0 = vector.load %arg2[%c0, %c0_0] : memref<10x16xf32, #tpu.memory_space<vmem>>, vector<10x16xf32>
    %c0_1 = arith.constant 0 : index
    %c0_2 = arith.constant 0 : index
    %c0_3 = arith.constant 0 : index
    %1 = vector.load %arg1[%c0_1, %c0_2, %c0_3] : memref<1x16x16xf32, #tpu.memory_space<vmem>>, vector<1x16x16xf32>
    %2 = vector.shape_cast %1 : vector<1x16x16xf32> to vector<16x16xf32>
    %cst = arith.constant dense<0.000000e+00> : vector<10x16xf32>
    %3 = tpu.matmul %0, %2, %cst {dimension_numbers = #tpu.dot_dimension_numbers<[1], [0], [0], [1], [0, 0, 1, 1], [], []>} : vector<10x16xf32>, vector<16x16xf32>, vector<10x16xf32> -> vector<10x16xf32>
    %4 = vector.extract_strided_slice %3 {offsets = [0, 0], sizes = [5, 16], strides = [1, 1]} : vector<10x16xf32> to vector<5x16xf32>
    %5 = vector.shape_cast %4 : vector<5x16xf32> to vector<5x2x8xf32>
    %6 = vector.extract_strided_slice %3 {offsets = [5, 0], sizes = [5, 16], strides = [1, 1]} : vector<10x16xf32> to vector<5x16xf32>
    %7 = vector.shape_cast %6 : vector<5x16xf32> to vector<5x2x8xf32>
    %8 = tpu.concatenate %5, %7 in 2 : vector<5x2x8xf32>, vector<5x2x8xf32> -> vector<5x2x16xf32>
    %c0_4 = arith.constant 0 : index
    %c0_5 = arith.constant 0 : index
    %c0_6 = arith.constant 0 : index
    %9 = vector.load %arg3[%c0_4, %c0_5, %c0_6] : memref<5x16x16xf32, #tpu.memory_space<vmem>>, vector<5x16x16xf32>
    "tpu.trace_start"() <{level = 10 : i32, message = "fbi,fio->fbo"}> : () -> ()
    %cst_7 = arith.constant dense<0.000000e+00> : vector<5x2x16xf32>
    %10 = tpu.matmul %8, %9, %cst_7 {dimension_numbers = #tpu.dot_dimension_numbers<[2], [1], [1], [2], [0, 0, 0, 1, 1, 2], [0], [0]>} : vector<5x2x16xf32>, vector<5x16x16xf32>, vector<5x2x16xf32> -> vector<5x2x16xf32>
    "tpu.trace_stop"() : () -> ()
    %11 = vector.extract_strided_slice %10 {offsets = [0, 0, 0], sizes = [5, 2, 8], strides = [1, 1, 1]} : vector<5x2x16xf32> to vector<5x2x8xf32>
    %12 = vector.extract_strided_slice %10 {offsets = [0, 0, 8], sizes = [5, 2, 8], strides = [1, 1, 1]} : vector<5x2x16xf32> to vector<5x2x8xf32>
    %13 = tpu.concatenate %11, %12 in 0 : vector<5x2x8xf32>, vector<5x2x8xf32> -> vector<10x2x8xf32>
    %14 = vector.shape_cast %13 : vector<10x2x8xf32> to vector<10x16xf32>
    %c0_8 = arith.constant 0 : index
    %c0_9 = arith.constant 0 : index
    %15 = vector.load %arg4[%c0_8, %c0_9] : memref<16x10xf32, #tpu.memory_space<vmem>>, vector<16x10xf32>
    %cst_10 = arith.constant dense<0.000000e+00> : vector<16x16xf32>
    %16 = tpu.matmul %15, %14, %cst_10 {dimension_numbers = #tpu.dot_dimension_numbers<[1], [0], [0], [1], [0, 0, 1, 1], [], []>} : vector<16x10xf32>, vector<10x16xf32>, vector<16x16xf32> -> vector<16x16xf32>
    %c0_11 = arith.constant 0 : index
    %c0_12 = arith.constant 0 : index
    %c0_13 = arith.constant 0 : index
    %17 = vector.load %arg5[%c0_11, %c0_12, %c0_13] : memref<1x16x16xf32, #tpu.memory_space<vmem>>, vector<1x16x16xf32>
    %18 = vector.shape_cast %17 : vector<1x16x16xf32> to vector<16x16xf32>
    %19 = vector.shape_cast %16 : vector<16x16xf32> to vector<1x16x16xf32>
    tpu.vector_store %arg5[%c0_11, %c0_12, %c0_13], %19 {strides = array<i32>} : memref<1x16x16xf32, #tpu.memory_space<vmem>>, vector<1x16x16xf32>,
    return
  }
  func.func @transform_0(%arg0: i32) -> (i32, i32, i32) {
    %c0_i32 = arith.constant 0 : i32
    %c0_i32_0 = arith.constant 0 : i32
    %c0_i32_1 = arith.constant 0 : i32
    return %arg0, %c0_i32, %c0_i32_0 : i32, i32, i32
  }
  func.func @transform_1(%arg0: i32) -> (i32, i32) {
    %c0_i32 = arith.constant 0 : i32
    %c0_i32_0 = arith.constant 0 : i32
    %c0_i32_1 = arith.constant 0 : i32
    return %c0_i32, %c0_i32_0 : i32, i32
  }
  func.func @transform_2(%arg0: i32) -> (i32, i32, i32) {
    %c0_i32 = arith.constant 0 : i32
    %c0_i32_0 = arith.constant 0 : i32
    %c0_i32_1 = arith.constant 0 : i32
    %c0_i32_2 = arith.constant 0 : i32
    return %c0_i32, %c0_i32_0, %c0_i32_1 : i32, i32, i32
  }
  func.func @transform_3(%arg0: i32) -> (i32, i32) {
    %c0_i32 = arith.constant 0 : i32
    %c0_i32_0 = arith.constant 0 : i32
    %c0_i32_1 = arith.constant 0 : i32
    return %c0_i32, %c0_i32_0 : i32, i32
  }
  func.func @transform_4(%arg0: i32) -> (i32, i32, i32) {
    %c0_i32 = arith.constant 0 : i32
    %c0_i32_0 = arith.constant 0 : i32
    %c0_i32_1 = arith.constant 0 : i32
    return %arg0, %c0_i32, %c0_i32_0 : i32, i32, i32
  }
}

</mosaic_0001>

<bundles_post_ra>
// kernel: neg.1
= control target key start
LH: loop header
LB: loop body
LE: loop exit
PB: predicated region body
PF: predicated region fallthrough
CT: control target
= control target key end

     0   :  { %2 = vsyncpa [#allocation1], 0  ;;  %s82_s6 = smov [#allocation0]   ;;  %s113_s0 = inlined_call_operand.hbm [shape: f32[8,8,5], index: 0, kind: input, shape index: {}]   ;;  %s114_s1 = inlined_call_operand.vmem [shape: f32[8,8,5], index: 1, kind: output, shape index: {}]  }
   0x1   :  { %s6_s7 = sshll.u32 %s82_s6, 4  ;;  %s7_s7 = int_to_ptr.vmem [resolvable:$true] %s6_s7 }
   0x2   :  { %s68_s8 = scalar_lea.vmem %s7_s7, 640  ;;  %p73_p1 = scmp.lt.s32.totalorder %s7_s7, %s7_s7 }
   0x3   :  { %p69_p0 = scmp.ne.s32.totalorder %s7_s7, %s68_s8  ;;  %p74_p2 = scmp.lt.s32.totalorder %s68_s8, %s68_s8 }
   0x5   :  { %p75_p3 = por %p74_p2, %p73_p1 }
   0x7   :  { %p76_p4 = pnand %p75_p3, %p69_p0 }
   0x9   :  { %79 = shalt.err (!%p76_p4)
}
   0xa   :  { %s83_s9 = smov 128   ;;  %s84_s10 = smov 8  }
   0xb   :  { %12 = dma.hbm_to_vmem [thread:$0]  %s113_s0, 640, %s7_s7, [#allocation1], %s83_s9, %s83_s9, %s84_s10  }
   0xc   :  { %80 = dma.done.wait [#allocation1], 640  }
   0xd   :  { %81 = vsyncadd [#allocation1], 4294966656  ;;  %v14_v0 = vld [vmem:[#allocation0] sm:$0xff]  ;;  %v21_v1 = vld [vmem:[#allocation0 + $0x8] sm:$0xff] }
   0xe   :  { %v29_v2 = vld [vmem:[#allocation0 + $0x10] sm:$0xff]  ;;  %v17_v3 = vxor.u32 2147483648, %v14_v0  ;;  %v24_v4 = vxor.u32 2147483648, %v21_v1  ;;  %v37_v6 = vld [vmem:[#allocation0 + $0x18] sm:$0xff]  ;;  %v45_v7 = vld [vmem:[#allocation0 + $0x20] sm:$0xff] }
   0xf   :  { %v32_v5 = vxor.u32 2147483648, %v29_v2  ;;  %v40_v8 = vxor.u32 2147483648, %v37_v6  ;;  %v48_v9 = vxor.u32 2147483648, %v45_v7 }
  0x10   :  { %19 = vst [vmem:[%s114_s1] sm:$0xff] %v17_v3  ;;  %53 = vst [vmem:[%s114_s1 + $0x8] sm:$0xff] %v24_v4 }
  0x11   :  { %54 = vst [vmem:[%s114_s1 + $0x10] sm:$0xff] %v32_v5  ;;  %55 = vst [vmem:[%s114_s1 + $0x18] sm:$0xff] %v40_v8 }
  0x12   :  { %56 = vst [vmem:[%s114_s1 + $0x20] sm:$0xff] %v48_v9 }
  0x13   :  { %52 = vsyncpa [#allocation1], 1 }

// kernel: sparse_kernel_ft1d.1
= control target key start
LH: loop header
LB: loop body
LE: loop exit
PB: predicated region body
PF: predicated region fallthrough
CT: control target
= control target key end

     0   :  { %s1169_s15 = smov 0   ;;  %s1326_s0 = inlined_call_operand.vmem [shape: f32[2,16,16], index: 0, kind: input, shape index: {}]   ;;  %s1327_s1 = inlined_call_operand.vmem [shape: f32[10,16], index: 1, kind: input, shape index: {}]   ;;  %s1328_s2 = inlined_call_operand.vmem [shape: f32[5,16,16], index: 2, kind: input, shape index: {}]   ;;  %s1329_s3 = inlined_call_operand.vmem [shape: f32[16,10], index: 3, kind: input, shape index: {}]   ;;  %s1330_s4 = inlined_call_operand.vmem [shape: f32[2,16,16], index: 4, kind: output, shape index: {}]  }
   0x1 LB: > { %s1019_s16 = sadd.s32 4294967295, %s1136_s15   ;;  %p1023_p0 = scmp.ge.s32.totalorder %s1136_s15, 1  ;;  %s1136_s15 = sphi %s1169_s15, %s14_s15  }
   0x2   : > { %p162_p1 = scmp.lt.s32.totalorder %s1136_s15, 3 }
   0x4   : > { %p163_p2 = pnand %p1023_p0, %p162_p1 }
   0x5   : > { %p188_p3 = scmp.lt.s32.totalorder (!%p163_p2), %s1019_s16, 1  ;;  %s1139_s25 = smov (!%p163_p2), 120  }
   0x6   : > { %166 = sbr.rel (%p163_p2) target bundleno = 1098 (0x44a), region = 36  ;;  %s1143_s8 = smov (!%p163_p2), 8  }
   0xb   : > { %v198_v0 = vld [vmem:[%s1327_s1] sm:$0xff]  ;;  %vm202_vm0 = vcmask 130048   ;;  %s1332_s16 = smov (!%p188_p3, %s1019_s16), 1  ;;  %v199_v3 = vld [vmem:[%s1327_s1 + $0x8] sm:$0x3]  ;;  %v1138_v4 = vmov 0.0   ;;  %v291_v10 = vlaneseq }
   0xc   : > { %1071 = vmatprep.mubr.msk.f32.mxu0 %vm202_vm0, %v198_v0  ;;  %s1042_s19 = sshll.u32 %s1332_s16, 4  ;;  %1074 = vmatprep.subr.mxu1 %v1138_v4  ;;  %v411_v7 = vld [vmem:[%s1328_s2 + $0x8] sm:$0xff]  ;;  %v1140_v8 = vmov 1983009808   ;;  %v410_v12 = vld [vmem:[%s1328_s2] sm:$0xff]  ;;  %vm1141_vm1 = vmmov 0  }
   0xd   : > { %s192_s22 = scalar_lea.vmem %s1326_s0, %s1042_s19  ;;  %1075 = vmatpush3.msra.mxu1 %v411_v7  ;;  %v289_v9 = vunpack.c.l.s4 %v1140_v8  ;;  %1078 = vmatprep.mubr.msk.f32.mxu1 %vm1141_vm1, %v1138_v4  ;;  %v292_v15 = vshrl.u32 %v291_v10, 7  ;;  %v1142_v16 = vmov 1934713408   ;;  %vm333_vm2 = vcmask 1042432   ;;  %v413_v18 = vld [vmem:[%s1328_s2 + $0x18] sm:$0xff]  ;;  %v412_v21 = vld [vmem:[%s1328_s2 + $0x10] sm:$0xff]  ;;  %s197_s30 = scalar_lea.vmem %s1330_s4, %s1042_s19 }
   0xe   : > { %v201_v1 = vld [vmem:[%s192_s22 + $0x8] sm:$0xff]  ;;  %v200_v2 = vld [vmem:[%s192_s22] sm:$0xff]  ;;  %1076 = vmatprep.subr.mxu1 %v1138_v4  ;;  %v307_v17 = vunpack.c.l.s4 %v1142_v16  ;;  %vm404_vm3 = vcmask 64512   ;;  %v417_v52 = vld [vmem:[%s1328_s2 + $0x38] sm:$0xff]  ;;  %vm876_vm4 = vcmask 80896   ;;  %vm883_vm5 = vcmask 1041408  }
   0xf   : > { %1067 = vmatprep.subr.mxu0 %v201_v1  ;;  %1077 = vmatpush3.msra.mxu1 %v410_v12  ;;  %v290_v14 = vunpack.c.0.s8 %v289_v9  ;;  %v415_v45 = vld [vmem:[%s1328_s2 + $0x28] sm:$0xff]  ;;  %v414_v48 = vld [vmem:[%s1328_s2 + $0x20] sm:$0xff]  ;;  %v416_v57 = vld [vmem:[%s1328_s2 + $0x30] sm:$0xff] }
  0x10   : > { %1068 = vmatpush3.msra.mxu0 %v201_v1  ;;  %1088 = vmatprep.subr.mxu1 %v1138_v4  ;;  %v308_v26 = vunpack.c.0.s8 %v307_v17  ;;  %v419_v56 = vld [vmem:[%s1328_s2 + $0x48] sm:$0xff]  ;;  %v418_v59 = vld [vmem:[%s1328_s2 + $0x40] sm:$0xff] }
  0x11   : > { %1069 = vmatprep.subr.mxu0 %v200_v2  ;;  %v1224_v25 = vsub.s32 %v290_v14, %v292_v15 }
  0x12   : > { %1070 = vmatpush3.msra.mxu0 %v200_v2  ;;  %v1230_v30 = vsub.s32 %v308_v26, %v292_v15 }
  0x13   : > { %1072 = vmatmul.mubr.msk.f32.vlgmr.msra.gmra.mxu0 %vm202_vm0, %v199_v3  ;;  %1081 = vmatprep.subr.mxu0 %v1138_v4 }
  0x14   : > { %1085 = vmatprep.mubr.msk.f32.mxu0 %vm1141_vm1, %v1138_v4  ;;  %1082 = vmatpush3.msra.mxu0 %v413_v18 }
  0x15   : > { %1083 = vmatprep.subr.mxu0 %v1138_v4 }
  0x16   : > { %1084 = vmatpush3.msra.mxu0 %v412_v21 }
  0x17   : > { %1095 = vmatprep.subr.mxu0 %v1138_v4 }
  0xd3   : > { %v1073_v5 = vpop.f32.mrf.mxu0 }
  0xd4   : > { %v335_v19 = vrot.slane %v1073_v5, 5 }
  0xd5   : > { %v1195_v6 = vpop.f32.mrf.mxu0 }
  0xd6   : > { %285 = vrot.lane.b32.xlu0 %v1195_v6, %s1139_s25  ;;  %v334_v13 = vrot.slane %v1195_v6, 5  ;;  %v294_v40 = vrot.slane %v1195_v6, %v1224_v25 }
  0xd8   : > { %v336_v24 = vsel %vm333_vm2, %v334_v13, %v335_v19 }
  0xd9   : > { %v348_v29 = vrot.slane %v336_v24, %v1224_v25 }
  0xda   : > { %331 = vrot.lane.b32.xlu0 %v1073_v5, %s1139_s25 }
 0x148   : > { %v1204_v11 = vpop.permute.xlu0 %285 }
 0x149   : > { %v337_v22 = vrot.slane %v1204_v11, 5  ;;  %v302_v39 = vrot.slane %v1204_v11, %v1224_v25  ;;  %v1030_v53 = vcombine.high %v1195_v6, %v1204_v11 }
 0x14b   : > { %v304_v41 = vcombine.low %v294_v40, %v302_v39  ;;  %v305_v42 = vcombine.high %v294_v40, %v302_v39  ;;  %v329_v62 = vrot.slane %v1030_v53, %v1230_v30 }
 0x14c   : > { %v332_v20 = vpop.permute.xlu0 %331 }
 0x14d   : > { %v338_v23 = vrot.slane %v332_v20, 5  ;;  %v312_v43 = vrot.slane %v304_v41, %v1230_v30  ;;  %v319_v49 = vrot.slane %v305_v42, %v1230_v30 }
 0x14f   : > { %v339_v27 = vsel %vm333_vm2, %v337_v22, %v338_v23  ;;  %v321_v50 = vcombine.high %v312_v43, %v1138_v4  ;;  %v322_v58 = vcombine.high %v319_v49, %v1138_v4 }
 0x150   : > { %v356_v28 = vrot.slane %v339_v27, %v1224_v25  ;;  %v1031_v35 = vcombine.high %v336_v24, %v339_v27  ;;  %v874_v24 = vld [vmem:[%s1329_s3] sm:$0xff] }
 0x152   : > { %v359_v31 = vcombine.high %v348_v29, %v356_v28  ;;  %v358_v32 = vcombine.low %v348_v29, %v356_v28  ;;  %v383_v37 = vrot.slane %v1031_v35, %v1230_v30 }
 0x154   : > { %v373_v33 = vrot.slane %v359_v31, %v1230_v30  ;;  %v366_v34 = vrot.slane %v358_v32, %v1230_v30 }
 0x156   : > { %393 = vrot.lane.b32.xlu0 %v373_v33, %s1143_s8  ;;  %389 = vrot.lane.b32.xlu1 %v366_v34, %s1143_s8  ;;  %v375_v36 = vcombine.high %v366_v34, %v1138_v4  ;;  %v376_v38 = vcombine.high %v373_v33, %v1138_v4 }
 0x15a   : > { %397 = vrot.lane.b32.xlu0 %v383_v37, %s1143_s8  ;;  %391 = vrot.lane.b32.xlu1 %v375_v36, %s1143_s8 }
 0x15e   : > { %395 = vrot.lane.b32.xlu1 %v376_v38, %s1143_s8 }
 0x1c8   : > { %v390_v44 = vpop.permute.xlu1 %389  ;;  %v394_v47 = vpop.permute.xlu0 %393 }
 0x1c9   : > { %v405_v46 = vsel %vm404_vm3, %v312_v43, %v390_v44  ;;  %v407_v54 = vsel %vm404_vm3, %v319_v49, %v394_v47 }
 0x1ca   : > { %1079 = vmatmul.mubr.msk.f32.vlgmr.msra.gmra.mxu1 %vm202_vm0, %v405_v46 }
 0x1cb   : > { %1089 = vmatpush3.msra.mxu1 %v415_v45  ;;  %1092 = vmatprep.mubr.msk.f32.mxu1 %vm1141_vm1, %v1138_v4 }
 0x1cc   : > { %v392_v51 = vpop.permute.xlu1 %391  ;;  %1090 = vmatprep.subr.mxu1 %v1138_v4  ;;  %v398_v60 = vpop.permute.xlu0 %397 }
 0x1cd   : > { %v406_v55 = vsel %vm404_vm3, %v321_v50, %v392_v51  ;;  %1091 = vmatpush3.msra.mxu1 %v414_v48  ;;  %v409_v0 = vsel %vm404_vm3, %v329_v62, %v398_v60 }
 0x1ce   : > { %1086 = vmatmul.mubr.msk.f32.vlgmr.msra.gmra.mxu0 %vm202_vm0, %v406_v55  ;;  %1093 = vmatmul.mubr.msk.f32.vlgmr.msra.gmra.mxu1 %vm202_vm0, %v407_v54 }
 0x1cf   : > { %1102 = vmatprep.subr.mxu1 %v1138_v4  ;;  %1096 = vmatpush3.msra.mxu0 %v417_v52 }
 0x1d0   : > { %1103 = vmatpush3.msra.mxu1 %v419_v56  ;;  %v396_v61 = vpop.permute.xlu1 %395  ;;  %1097 = vmatprep.subr.mxu0 %v1138_v4 }
 0x1d1   : > { %v408_v63 = vsel %vm404_vm3, %v322_v58, %v396_v61  ;;  %1104 = vmatprep.subr.mxu1 %v1138_v4  ;;  %1098 = vmatpush3.msra.mxu0 %v416_v57 }
 0x1d2   : > { %1099 = vmatprep.mubr.msk.f32.mxu0 %vm1141_vm1, %v1138_v4  ;;  %1105 = vmatpush3.msra.mxu1 %v418_v59 }
 0x1d3   : > { %1106 = vmatprep.mubr.msk.f32.mxu1 %vm1141_vm1, %v1138_v4  ;;  %1100 = vmatmul.mubr.msk.f32.vlgmr.msra.gmra.mxu0 %vm202_vm0, %v408_v63 }
 0x1d4   : > { %1107 = vmatmul.mubr.msk.f32.vlgmr.msra.gmra.mxu1 %vm202_vm0, %v409_v0  ;;  %1113 = vmatprep.mubr.msk.f32.mxu0 %vm876_vm4, %v874_v24 }
 0x28a   : > { %v489_v1 = vpop.f32.mrf.mxu1 }
 0x28b   : > { %790 = vrot.lane.b32.xlu1 %v489_v1, %s1139_s25 }
 0x28c   : > { %v1080_v2 = vpop.f32.mrf.mxu1 }
 0x28e   : > { %v562_v3 = vpop.f32.mrf.mxu0  ;;  %v635_v5 = vpop.f32.mrf.mxu1 }
 0x28f   : > { %v803_v6 = vcombine.low %v489_v1, %v635_v5  ;;  %794 = vrot.lane.b32.xlu1 %v635_v5, %s1139_s25  ;;  %792 = vrot.lane.b32.xlu0 %v562_v3, %s1139_s25 }
 0x290   : > { %v1087_v7 = vpop.f32.mrf.mxu0  ;;  %v1094_v8 = vpop.f32.mrf.mxu1 }
 0x291   : > { %v810_v13 = vrot.slane %v803_v6, %v1224_v25 }
 0x293   : > { %v708_v9 = vpop.f32.mrf.mxu0 }
 0x294   : > { %v811_v10 = vcombine.low %v562_v3, %v708_v9  ;;  %v781_v11 = vpop.f32.mrf.mxu1  ;;  %796 = vrot.lane.b32.xlu0 %v708_v9, %s1139_s25 }
 0x295   : > { %798 = vrot.lane.b32.xlu1 %v781_v11, %s1139_s25  ;;  %v1101_v12 = vpop.f32.mrf.mxu0 }
 0x296   : > { %v818_v14 = vrot.slane %v811_v10, %v1224_v25  ;;  %v1108_v15 = vpop.f32.mrf.mxu1 }
 0x298   : > { %v835_v16 = vcombine.low %v810_v13, %v818_v14 }
 0x29a   : > { %v842_v31 = vrot.slane %v835_v16, %v1230_v30 }
 0x2fd   : > { %v791_v17 = vpop.permute.xlu1 %790 }
 0x301   : > { %v795_v18 = vpop.permute.xlu1 %794  ;;  %v793_v19 = vpop.permute.xlu0 %792 }
 0x302   : > { %v827_v20 = vcombine.low %v791_v17, %v795_v18  ;;  %v819_v21 = vcombine.low %v781_v11, %v793_v19 }
 0x304   : > { %v834_v22 = vrot.slane %v827_v20, %v1224_v25  ;;  %v826_v23 = vrot.slane %v819_v21, %v1224_v25 }
 0x306   : > { %v843_v26 = vcombine.low %v826_v23, %v834_v22  ;;  %v797_v27 = vpop.permute.xlu0 %796 }
 0x307   : > { %v799_v28 = vpop.permute.xlu1 %798 }
 0x308   : > { %v855_v29 = vcombine.low %v797_v27, %v799_v28  ;;  %v850_v32 = vrot.slane %v843_v26, %v1230_v30 }
 0x30a   : > { %v862_v33 = vrot.slane %v855_v29, %v1230_v30  ;;  %v852_v34 = vcombine.high %v842_v31, %v850_v32  ;;  %v851_v25 = vcombine.low %v842_v31, %v850_v32  ;;  %v875_v30 = vld [vmem:[%s1329_s3 + $0x8] sm:$0xff] }
 0x30c   : > { %v863_v35 = vcombine.high %v862_v33, %v1138_v4  ;;  %866 = vrot.lane.b32.xlu1 %v852_v34, %s1143_s8 }
 0x30e   : > { %868 = vrot.lane.b32.xlu0 %v863_v35, %s1143_s8 }
 0x37e   : > { %v867_v37 = vpop.permute.xlu1 %866 }
 0x37f   : > { %v872_v39 = vsel %vm404_vm3, %v851_v25, %v867_v37 }
 0x380   : > { %v869_v36 = vpop.permute.xlu0 %868 }
 0x381   : > { %v873_v38 = vsel %vm404_vm3, %v862_v33, %v869_v36 }
 0x382   : > { %1109 = vmatprep.subr.msk.mxu0 %vm883_vm5, %v873_v38 }
 0x383   : > { %1110 = vmatpush3.msk.msra.mxu0 %vm883_vm5, %v873_v38 }
 0x384   : > { %1111 = vmatprep.subr.mxu0 %v872_v39 }
 0x385   : > { %1112 = vmatpush3.msra.mxu0 %v872_v39 }
 0x386   : > { %1114 = vmatmul.mubr.msk.f32.vlgmr.msra.gmra.mxu0 %vm876_vm4, %v875_v30 }
 0x446   : > { %v1115_v4 = vpop.f32.mrf.mxu0 }
 0x447   : > { %963 = vst.msk [vmem:[%s197_s30 + $0x8] sm:$0xff] %vm202_vm0, %v1115_v4 }
 0x448   : > { %v953_v40 = vpop.f32.mrf.mxu0 }
 0x449   : > { %962 = vst.msk [vmem:[%s197_s30] sm:$0xff] %vm202_vm0, %v953_v40 }
 0x44a PF: > { %s14_s15 = sadd.s32 1, %s1136_s15  }
 0x44b   : > { %p11_p4 = scmp.ge.s32.totalorder %s14_s15, 4  }
 0x44d   :  { %13 = sbr.rel (!%p11_p4) target bundleno = 1 (0x1), region = 66 }

</bundles_post_ra>
